<compile_context>
chip_gen: v7x
topology: tpu7x:2x2x1
jax: 0.10.0
libtpu: 0.0.40
codegen_flags: <defaults>
</compile_context>

<pallas_src>
import jax
import jax.numpy as jnp
import numpy as np
from jax.experimental import pallas as pl
from jax.experimental.pallas import tpu as pltpu


def _layer_norm(x, gamma, beta, eps=1e-5):
    mu = jnp.mean(x, axis=-1, keepdims=True)
    var = jnp.mean(jnp.square(x - mu), axis=-1, keepdims=True)
    return (x - mu) * jax.lax.rsqrt(var + eps) * gamma + beta


def transformer_block_kernel(q_ref, k_ref, v_ref, bias_ref,
                             wq_ref, wk_ref, wv_ref, wo_ref, bo_ref,
                             w1_ref, b1_ref, w2_ref, b2_ref,
                             g1_ref, be1_ref, g2_ref, be2_ref,
                             o_ref,
                             acc_ref, kproj_ref, vproj_ref):
    f32 = jnp.float32
    bf16 = jnp.bfloat16

    qt = pl.program_id(1)               # query-tile index
    h = pl.program_id(2)                # head index
    n_head = pl.num_programs(2)

    # Zero the per-(batch, q-tile) output-projection accumulator on the first head.
    @pl.when(h == 0)
    def _init():
        acc_ref[...] = jnp.zeros_like(acc_ref)

    # Project K / V for this head once per (batch, head); reused for every q-tile.
    @pl.when(qt == 0)
    def _project_kv():
        kb = k_ref[0]                                     # (Lk, D) bf16
        vb = v_ref[0]
        kproj_ref[h] = jnp.dot(kb, wk_ref[h], preferred_element_type=f32).astype(bf16)
        vproj_ref[h] = jnp.dot(vb, wv_ref[h], preferred_element_type=f32).astype(bf16)

    q = q_ref[0]                                          # (tq, D) f32
    # WQ is pre-scaled by 1/sqrt(d_model) in the wrapper.
    qh = jnp.dot(q.astype(bf16), wq_ref[h], preferred_element_type=f32)   # (tq, d_k)
    kh = kproj_ref[h]                                     # (Lk, d_k) bf16
    vh = vproj_ref[h]                                     # (Lk, d_k) bf16

    # Logits: contract d_k without materializing a transpose; add mask bias (-1e20).
    e = jax.lax.dot_general(qh.astype(bf16), kh,
                            (((1,), (1,)), ((), ())),
                            preferred_element_type=f32)   # (tq, Lk)
    e = e + bias_ref[0].astype(f32)

    # Numerically-stable f32 softmax; denominator reciprocal runs on the EUP.
    e = e - jnp.max(e, axis=-1, keepdims=True)
    p = jnp.exp(e)
    p = p * pl.reciprocal(jnp.sum(p, axis=-1, keepdims=True), approx=True)

    ctx = jnp.dot(p.astype(bf16), vh, preferred_element_type=f32)         # (tq, d_k)
    # Fused fc_out: concat_h(ctx_h) @ Wo  ==  sum_h ctx_h @ Wo[h]
    acc_ref[...] += jnp.dot(ctx.astype(bf16), wo_ref[h], preferred_element_type=f32)

    # Last head: finish attention, residual + LN1, FFNN (LeakyReLU), residual + LN2.
    @pl.when(h == n_head - 1)
    def _finalize():
        attention = acc_ref[...] + bo_ref[...]
        x = _layer_norm(attention + q, g1_ref[...], be1_ref[...])
        h1 = jnp.dot(x.astype(bf16), w1_ref[...], preferred_element_type=f32) + b1_ref[...]
        h1 = jnp.where(h1 >= 0, h1, 0.01 * h1)            # LeakyReLU(0.01)
        ff = jnp.dot(h1.astype(bf16), w2_ref[...], preferred_element_type=f32) + b2_ref[...]
        o_ref[0] = _layer_norm(ff + x, g2_ref[...], be2_ref[...]).astype(o_ref.dtype)


def _pick_q_tile(L):
    for t in (512, 256, 128):
        if L % t == 0:
            return t
    return L


def transformer_block(Q, K, V, mask, params, *, n_head):
    B, Lq, D = Q.shape
    Lk = K.shape[1]
    d_k = D // n_head
    assert n_head * d_k == D, "Embed size needs to be divisible by heads"
    d_ff = params["w1_t"].shape[1]

    tq = _pick_q_tile(Lq)
    n_qt = Lq // tq

    bf16 = jnp.bfloat16
    inv_scale = jnp.float32(1.0 / (D ** 0.5))   # matches PyTorch: / d_model**0.5

    # Split projection weights per head; fold the logit scale into WQ (free).
    wq_h = (params["wq_t"] * inv_scale).reshape(D, n_head, d_k).transpose(1, 0, 2).astype(bf16)
    wk_h = params["wk_t"].reshape(D, n_head, d_k).transpose(1, 0, 2).astype(bf16)
    wv_h = params["wv_t"].reshape(D, n_head, d_k).transpose(1, 0, 2).astype(bf16)
    wo_h = params["wo_t"].reshape(n_head, d_k, D).astype(bf16)
    w1 = params["w1_t"].astype(bf16)
    w2 = params["w2_t"].astype(bf16)

    # K / V only ever feed bf16 MXU operands -> stream them as bf16 (half the DMA,
    # bit-identical math).  Q stays f32 because it is also the residual input.
    K_bf = K.astype(bf16)
    V_bf = V.astype(bf16)

    # Additive mask bias (0 => masked -> -1e20), streamed as bf16.
    mask_bias = jnp.where(mask == 0.0, jnp.float32(-1e20), jnp.float32(0.0)).astype(bf16)

    def const_spec(shape):
        return pl.BlockSpec(shape, lambda b, qt, h: tuple(0 for _ in shape))

    in_specs = [
        pl.BlockSpec((1, tq, D), lambda b, qt, h: (b, qt, 0)),    # Q (f32)
        pl.BlockSpec((1, Lk, D), lambda b, qt, h: (b, 0, 0)),     # K (bf16)
        pl.BlockSpec((1, Lk, D), lambda b, qt, h: (b, 0, 0)),     # V (bf16)
        pl.BlockSpec((1, tq, Lk), lambda b, qt, h: (b, qt, 0)),   # mask bias (bf16)
        const_spec((n_head, D, d_k)),                             # WQ (all heads, pre-scaled)
        const_spec((n_head, D, d_k)),                             # WK (all heads)
        const_spec((n_head, D, d_k)),                             # WV (all heads)
        const_spec((n_head, d_k, D)),                             # Wo (all heads)
        const_spec((1, D)),                                       # bo
        const_spec((D, d_ff)),                                    # W1
        const_spec((1, d_ff)),                                    # b1
        const_spec((d_ff, D)),                                    # W2
        const_spec((1, D)),                                       # b2
        const_spec((1, D)),                                       # gamma1
        const_spec((1, D)),                                       # beta1
        const_spec((1, D)),                                       # gamma2
        const_spec((1, D)),                                       # beta2
    ]

    # TODO(synk): pad D to a multiple of 128 (needs lane-masked LayerNorm) for
    # lane-dense output stores when d_model is small.
    return pl.pallas_call(
        transformer_block_kernel,
        out_shape=jax.ShapeDtypeStruct((B, Lq, D), Q.dtype),
        grid=(B, n_qt, n_head),
        in_specs=in_specs,
        out_specs=pl.BlockSpec((1, tq, D), lambda b, qt, h: (b, qt, 0)),
        scratch_shapes=[
            pltpu.VMEM((tq, D), jnp.float32),        # fc_out accumulator
            pltpu.VMEM((n_head, Lk, d_k), bf16),     # cached projected K (per head)
            pltpu.VMEM((n_head, Lk, d_k), bf16),     # cached projected V (per head)
        ],
        compiler_params=pltpu.CompilerParams(
            # q-tile axis is "arbitrary": the cached K/V projections are reused
            # across q-tiles, so only the batch axis is megacore-parallel.
            dimension_semantics=("parallel", "arbitrary", "arbitrary"),
            vmem_limit_bytes=48 * 1024 * 1024,
        ),
    )(Q, K_bf, V_bf, mask_bias,
      wq_h, wk_h, wv_h, wo_h, params["bo"],
      w1, params["b1"], w2, params["b2"],
      params["gamma1"], params["beta1"], params["gamma2"], params["beta2"])


def transformer_block_reference(Q, K, V, mask, params, *, n_head):
    """Plain-JAX f32 reference mirroring the PyTorch forward pass (dropout = identity)."""
    B, Lq, D = Q.shape
    Lk = K.shape[1]
    d_k = D // n_head

    Qp = Q @ params["wq_t"]
    Kp = K @ params["wk_t"]
    Vp = V @ params["wv_t"]
    Qh = Qp.reshape(B, Lq, n_head, d_k)
    Kh = Kp.reshape(B, Lk, n_head, d_k)
    Vh = Vp.reshape(B, Lk, n_head, d_k)
    e = jnp.einsum("nqhd,nkhd->nhqk", Qh, Kh)
    e = jnp.where(mask[:, None, :, :] == 0.0, -1e20, e)
    alpha = jax.nn.softmax(e / (D ** 0.5), axis=3)
    attn = jnp.einsum("bhqk,bkhd->bqhd", alpha, Vh).reshape(B, Lq, D)
    attn = attn @ params["wo_t"] + params["bo"]

    x = _layer_norm(attn + Q, params["gamma1"], params["beta1"])
    h1 = x @ params["w1_t"] + params["b1"]
    h1 = jnp.where(h1 >= 0, h1, 0.01 * h1)
    ff = h1 @ params["w2_t"] + params["b2"]
    return _layer_norm(ff + x, params["gamma2"], params["beta2"])


if __name__ == "__main__":
    B, L, D, H = 2, 8, 32, 4
    FE = 2                       # forward_expansion
    d_ff = FE * D

    key = jax.random.PRNGKey(0)
    keys = jax.random.split(key, 16)

    Q = jax.random.normal(keys[0], (B, L, D), dtype=jnp.float32)
    K = jax.random.normal(keys[1], (B, L, D), dtype=jnp.float32)
    V = jax.random.normal(keys[2], (B, L, D), dtype=jnp.float32)

    # Causal mask (broadcast over heads), 0 => masked.
    mask = jnp.tril(jnp.ones((L, L), dtype=jnp.float32))
    mask = jnp.broadcast_to(mask[None], (B, L, L))

    s = 0.05
    params = {
        # weights stored already transposed (in_dim, out_dim) so the math is x @ W_t
        "wq_t": s * jax.random.normal(keys[3], (D, D), dtype=jnp.float32),
        "wk_t": s * jax.random.normal(keys[4], (D, D), dtype=jnp.float32),
        "wv_t": s * jax.random.normal(keys[5], (D, D), dtype=jnp.float32),
        "wo_t": s * jax.random.normal(keys[6], (D, D), dtype=jnp.float32),
        "bo":   s * jax.random.normal(keys[7], (1, D), dtype=jnp.float32),
        "w1_t": s * jax.random.normal(keys[8], (D, d_ff), dtype=jnp.float32),
        "b1":   s * jax.random.normal(keys[9], (1, d_ff), dtype=jnp.float32),
        "w2_t": s * jax.random.normal(keys[10], (d_ff, D), dtype=jnp.float32),
        "b2":   s * jax.random.normal(keys[11], (1, D), dtype=jnp.float32),
        "gamma1": jnp.ones((1, D), dtype=jnp.float32),
        "beta1":  jnp.zeros((1, D), dtype=jnp.float32),
        "gamma2": jnp.ones((1, D), dtype=jnp.float32),
        "beta2":  jnp.zeros((1, D), dtype=jnp.float32),
    }

    out = transformer_block(Q, K, V, mask, params, n_head=H)
    out = jax.block_until_ready(out)

    ref = transformer_block_reference(Q, K, V, mask, params, n_head=H)
    # bf16 MXU operands + approximate reciprocal => relaxed tolerance vs f32 reference.
    np.testing.assert_allclose(np.asarray(out), np.asarray(ref), atol=3e-2, rtol=3e-2)

    print("KERNEL_OK")
</pallas_src>

<mosaic_0001>
module attributes {stable_mosaic.version = 11 : i64} {
  func.func @transformer_block_kernel(%arg0: i32, %arg1: i32, %arg2: i32, %arg3: memref<1x8x32xf32, #tpu.memory_space<vmem>>, %arg4: memref<1x8x32xbf16, #tpu.memory_space<vmem>>, %arg5: memref<1x8x32xbf16, #tpu.memory_space<vmem>>, %arg6: memref<1x8x8xbf16, #tpu.memory_space<vmem>>, %arg7: memref<4x32x8xbf16, #tpu.memory_space<vmem>>, %arg8: memref<4x32x8xbf16, #tpu.memory_space<vmem>>, %arg9: memref<4x32x8xbf16, #tpu.memory_space<vmem>>, %arg10: memref<4x8x32xbf16, #tpu.memory_space<vmem>>, %arg11: memref<1x32xf32, #tpu.memory_space<vmem>>, %arg12: memref<32x64xbf16, #tpu.memory_space<vmem>>, %arg13: memref<1x64xf32, #tpu.memory_space<vmem>>, %arg14: memref<64x32xbf16, #tpu.memory_space<vmem>>, %arg15: memref<1x32xf32, #tpu.memory_space<vmem>>, %arg16: memref<1x32xf32, #tpu.memory_space<vmem>>, %arg17: memref<1x32xf32, #tpu.memory_space<vmem>>, %arg18: memref<1x32xf32, #tpu.memory_space<vmem>>, %arg19: memref<1x32xf32, #tpu.memory_space<vmem>>, %arg20: memref<1x8x32xf32, #tpu.memory_space<vmem>>, %arg21: memref<8x32xf32, #tpu.memory_space<vmem>>, %arg22: memref<4x8x8xbf16, #tpu.memory_space<vmem>>, %arg23: memref<4x8x8xbf16, #tpu.memory_space<vmem>>) attributes {dimension_semantics = [#tpu.dimension_semantics<parallel>, #tpu.dimension_semantics<arbitrary>, #tpu.dimension_semantics<arbitrary>], iteration_bounds = array<i64: 2, 1, 4>, scalar_prefetch = 0 : i64, scratch_operands = 3 : i64, tpu.core_type = #tpu.core_type<tc>, window_params = [{transform_indices = @transform_0, window_bounds = array<i64: 1, 8, 32>}, {transform_indices = @transform_1, window_bounds = array<i64: 1, 8, 32>}, {transform_indices = @transform_2, window_bounds = array<i64: 1, 8, 32>}, {transform_indices = @transform_3, window_bounds = array<i64: 1, 8, 8>}, {pipeline_mode = #tpu.pipeline_mode<synchronous>, transform_indices = @transform_4, window_bounds = array<i64: 4, 32, 8>}, {pipeline_mode = #tpu.pipeline_mode<synchronous>, transform_indices = @transform_5, window_bounds = array<i64: 4, 32, 8>}, {pipeline_mode = #tpu.pipeline_mode<synchronous>, transform_indices = @transform_6, window_bounds = array<i64: 4, 32, 8>}, {pipeline_mode = #tpu.pipeline_mode<synchronous>, transform_indices = @transform_7, window_bounds = array<i64: 4, 8, 32>}, {pipeline_mode = #tpu.pipeline_mode<synchronous>, transform_indices = @transform_8, window_bounds = array<i64: 1, 32>}, {pipeline_mode = #tpu.pipeline_mode<synchronous>, transform_indices = @transform_9, window_bounds = array<i64: 32, 64>}, {pipeline_mode = #tpu.pipeline_mode<synchronous>, transform_indices = @transform_10, window_bounds = array<i64: 1, 64>}, {pipeline_mode = #tpu.pipeline_mode<synchronous>, transform_indices = @transform_11, window_bounds = array<i64: 64, 32>}, {pipeline_mode = #tpu.pipeline_mode<synchronous>, transform_indices = @transform_12, window_bounds = array<i64: 1, 32>}, {pipeline_mode = #tpu.pipeline_mode<synchronous>, transform_indices = @transform_13, window_bounds = array<i64: 1, 32>}, {pipeline_mode = #tpu.pipeline_mode<synchronous>, transform_indices = @transform_14, window_bounds = array<i64: 1, 32>}, {pipeline_mode = #tpu.pipeline_mode<synchronous>, transform_indices = @transform_15, window_bounds = array<i64: 1, 32>}, {pipeline_mode = #tpu.pipeline_mode<synchronous>, transform_indices = @transform_16, window_bounds = array<i64: 1, 32>}, {transform_indices = @transform_17, window_bounds = array<i64: 1, 8, 32>}]} {
    %c0_i32 = arith.constant 0 : i32
    %0 = arith.cmpi eq, %arg2, %c0_i32 : i32
    %1 = arith.extui %0 : i1 to i32
    %c0_i32_0 = arith.constant 0 : i32
    %2 = arith.cmpi ne, %1, %c0_i32_0 : i32
    scf.if %2 {
      %cst_26 = arith.constant 0.000000e+00 : f32
      %48 = vector.broadcast %cst_26 : f32 to vector<8x32xf32>
      %c0_27 = arith.constant 0 : index
      %c0_28 = arith.constant 0 : index
      %49 = vector.load %arg21[%c0_27, %c0_28] : memref<8x32xf32, #tpu.memory_space<vmem>>, vector<8x32xf32>
      tpu.vector_store %arg21[%c0_27, %c0_28], %48 {strides = array<i32>} : memref<8x32xf32, #tpu.memory_space<vmem>>, vector<8x32xf32>,
    } else {
    }
    %c0_i32_1 = arith.constant 0 : i32
    %3 = arith.cmpi eq, %arg1, %c0_i32_1 : i32
    %4 = arith.extui %3 : i1 to i32
    %c0_i32_2 = arith.constant 0 : i32
    %5 = arith.cmpi ne, %4, %c0_i32_2 : i32
    scf.if %5 {
      %c0_26 = arith.constant 0 : index
      %c0_27 = arith.constant 0 : index
      %c0_28 = arith.constant 0 : index
      %48 = vector.load %arg4[%c0_26, %c0_27, %c0_28] : memref<1x8x32xbf16, #tpu.memory_space<vmem>>, vector<1x8x32xbf16>
      %49 = vector.shape_cast %48 : vector<1x8x32xbf16> to vector<8x32xbf16>
      %c0_29 = arith.constant 0 : index
      %c0_30 = arith.constant 0 : index
      %c0_31 = arith.constant 0 : index
      %50 = vector.load %arg5[%c0_29, %c0_30, %c0_31] : memref<1x8x32xbf16, #tpu.memory_space<vmem>>, vector<1x8x32xbf16>
      %51 = vector.shape_cast %50 : vector<1x8x32xbf16> to vector<8x32xbf16>
      %52 = arith.index_cast %arg2 : i32 to index
      %c0_32 = arith.constant 0 : index
      %c0_33 = arith.constant 0 : index
      %53 = vector.load %arg8[%52, %c0_32, %c0_33] : memref<4x32x8xbf16, #tpu.memory_space<vmem>>, vector<1x32x8xbf16>
      %54 = vector.shape_cast %53 : vector<1x32x8xbf16> to vector<32x8xbf16>
      %cst_34 = arith.constant dense<0.000000e+00> : vector<8x8xf32>
      %55 = tpu.matmul %49, %54, %cst_34 {dimension_numbers = #tpu.dot_dimension_numbers<[1], [0], [0], [1], [0, 0, 1, 1], [], []>} : vector<8x32xbf16>, vector<32x8xbf16>, vector<8x8xf32> -> vector<8x8xf32>
      %56 = arith.truncf %55 : vector<8x8xf32> to vector<8x8xbf16>
      %57 = arith.index_cast %arg2 : i32 to index
      %c0_35 = arith.constant 0 : index
      %c0_36 = arith.constant 0 : index
      %58 = vector.load %arg22[%57, %c0_35, %c0_36] : memref<4x8x8xbf16, #tpu.memory_space<vmem>>, vector<1x8x8xbf16>
      %59 = vector.shape_cast %58 : vector<1x8x8xbf16> to vector<8x8xbf16>
      %60 = vector.shape_cast %56 : vector<8x8xbf16> to vector<1x8x8xbf16>
      tpu.vector_store %arg22[%57, %c0_35, %c0_36], %60 {strides = array<i32>} : memref<4x8x8xbf16, #tpu.memory_space<vmem>>, vector<1x8x8xbf16>,
      %61 = arith.index_cast %arg2 : i32 to index
      %c0_37 = arith.constant 0 : index
      %c0_38 = arith.constant 0 : index
      %62 = vector.load %arg9[%61, %c0_37, %c0_38] : memref<4x32x8xbf16, #tpu.memory_space<vmem>>, vector<1x32x8xbf16>
      %63 = vector.shape_cast %62 : vector<1x32x8xbf16> to vector<32x8xbf16>
      %cst_39 = arith.constant dense<0.000000e+00> : vector<8x8xf32>
      %64 = tpu.matmul %51, %63, %cst_39 {dimension_numbers = #tpu.dot_dimension_numbers<[1], [0], [0], [1], [0, 0, 1, 1], [], []>} : vector<8x32xbf16>, vector<32x8xbf16>, vector<8x8xf32> -> vector<8x8xf32>
      %65 = arith.truncf %64 : vector<8x8xf32> to vector<8x8xbf16>
      %66 = arith.index_cast %arg2 : i32 to index
      %c0_40 = arith.constant 0 : index
      %c0_41 = arith.constant 0 : index
      %67 = vector.load %arg23[%66, %c0_40, %c0_41] : memref<4x8x8xbf16, #tpu.memory_space<vmem>>, vector<1x8x8xbf16>
      %68 = vector.shape_cast %67 : vector<1x8x8xbf16> to vector<8x8xbf16>
      %69 = vector.shape_cast %65 : vector<8x8xbf16> to vector<1x8x8xbf16>
      tpu.vector_store %arg23[%66, %c0_40, %c0_41], %69 {strides = array<i32>} : memref<4x8x8xbf16, #tpu.memory_space<vmem>>, vector<1x8x8xbf16>,
    } else {
    }
    %c0 = arith.constant 0 : index
    %c0_3 = arith.constant 0 : index
    %c0_4 = arith.constant 0 : index
    %6 = vector.load %arg3[%c0, %c0_3, %c0_4] : memref<1x8x32xf32, #tpu.memory_space<vmem>>, vector<1x8x32xf32>
    %7 = vector.shape_cast %6 : vector<1x8x32xf32> to vector<8x32xf32>
    %8 = arith.truncf %7 : vector<8x32xf32> to vector<8x32xbf16>
    %9 = arith.index_cast %arg2 : i32 to index
    %c0_5 = arith.constant 0 : index
    %c0_6 = arith.constant 0 : index
    %10 = vector.load %arg7[%9, %c0_5, %c0_6] : memref<4x32x8xbf16, #tpu.memory_space<vmem>>, vector<1x32x8xbf16>
    %11 = vector.shape_cast %10 : vector<1x32x8xbf16> to vector<32x8xbf16>
    %cst = arith.constant dense<0.000000e+00> : vector<8x8xf32>
    %12 = tpu.matmul %8, %11, %cst {dimension_numbers = #tpu.dot_dimension_numbers<[1], [0], [0], [1], [0, 0, 1, 1], [], []>} : vector<8x32xbf16>, vector<32x8xbf16>, vector<8x8xf32> -> vector<8x8xf32>
    %13 = arith.index_cast %arg2 : i32 to index
    %c0_7 = arith.constant 0 : index
    %c0_8 = arith.constant 0 : index
    %14 = vector.load %arg22[%13, %c0_7, %c0_8] : memref<4x8x8xbf16, #tpu.memory_space<vmem>>, vector<1x8x8xbf16>
    %15 = vector.shape_cast %14 : vector<1x8x8xbf16> to vector<8x8xbf16>
    %16 = arith.index_cast %arg2 : i32 to index
    %c0_9 = arith.constant 0 : index
    %c0_10 = arith.constant 0 : index
    %17 = vector.load %arg23[%16, %c0_9, %c0_10] : memref<4x8x8xbf16, #tpu.memory_space<vmem>>, vector<1x8x8xbf16>
    %18 = vector.shape_cast %17 : vector<1x8x8xbf16> to vector<8x8xbf16>
    %19 = arith.truncf %12 : vector<8x8xf32> to vector<8x8xbf16>
    %cst_11 = arith.constant dense<0.000000e+00> : vector<8x8xf32>
    %20 = tpu.matmul %19, %15, %cst_11 {dimension_numbers = #tpu.dot_dimension_numbers<[1], [1], [0], [0], [0, 0, 1, 0], [], []>} : vector<8x8xbf16>, vector<8x8xbf16>, vector<8x8xf32> -> vector<8x8xf32>
    %c0_12 = arith.constant 0 : index
    %c0_13 = arith.constant 0 : index
    %c0_14 = arith.constant 0 : index
    %21 = vector.load %arg6[%c0_12, %c0_13, %c0_14] : memref<1x8x8xbf16, #tpu.memory_space<vmem>>, vector<1x8x8xbf16>
    %22 = vector.shape_cast %21 : vector<1x8x8xbf16> to vector<8x8xbf16>
    %23 = arith.extf %22 : vector<8x8xbf16> to vector<8x8xf32>
    %24 = arith.addf %20, %23 : vector<8x8xf32>
    %cst_15 = arith.constant dense<0xFF800000> : vector<8xf32>
    %25 = vector.multi_reduction <maximumf>, %24, %cst_15 [1] : vector<8x8xf32> to vector<8xf32>
    %26 = vector.shape_cast %25 : vector<8xf32> to vector<8x1xf32>
    %27 = vector.broadcast %26 : vector<8x1xf32> to vector<8x8xf32>
    %28 = arith.subf %24, %27 : vector<8x8xf32>
    %29 = math.exp %28 : vector<8x8xf32>
    %cst_16 = arith.constant dense<0.000000e+00> : vector<8xf32>
    %30 = vector.multi_reduction <add>, %29, %cst_16 [1] : vector<8x8xf32> to vector<8xf32>
    %31 = vector.shape_cast %30 : vector<8xf32> to vector<8x1xf32>
    %32 = tpu.reciprocal %31 {approx = true} : vector<8x1xf32> -> vector<8x1xf32>
    %33 = vector.broadcast %32 : vector<8x1xf32> to vector<8x8xf32>
    %34 = arith.mulf %29, %33 : vector<8x8xf32>
    %35 = arith.truncf %34 : vector<8x8xf32> to vector<8x8xbf16>
    %cst_17 = arith.constant dense<0.000000e+00> : vector<8x8xf32>
    %36 = tpu.matmul %35, %18, %cst_17 {dimension_numbers = #tpu.dot_dimension_numbers<[1], [0], [0], [1], [0, 0, 1, 1], [], []>} : vector<8x8xbf16>, vector<8x8xbf16>, vector<8x8xf32> -> vector<8x8xf32>
    %c0_18 = arith.constant 0 : index
    %c0_19 = arith.constant 0 : index
    %37 = vector.load %arg21[%c0_18, %c0_19] : memref<8x32xf32, #tpu.memory_space<vmem>>, vector<8x32xf32>
    %38 = arith.truncf %36 : vector<8x8xf32> to vector<8x8xbf16>
    %39 = arith.index_cast %arg2 : i32 to index
    %c0_20 = arith.constant 0 : index
    %c0_21 = arith.constant 0 : index
    %40 = vector.load %arg10[%39, %c0_20, %c0_21] : memref<4x8x32xbf16, #tpu.memory_space<vmem>>, vector<1x8x32xbf16>
    %41 = vector.shape_cast %40 : vector<1x8x32xbf16> to vector<8x32xbf16>
    %cst_22 = arith.constant dense<0.000000e+00> : vector<8x32xf32>
    %42 = tpu.matmul %38, %41, %cst_22 {dimension_numbers = #tpu.dot_dimension_numbers<[1], [0], [0], [1], [0, 0, 1, 1], [], []>} : vector<8x8xbf16>, vector<8x32xbf16>, vector<8x32xf32> -> vector<8x32xf32>
    %43 = arith.addf %37, %42 : vector<8x32xf32>
    %c0_23 = arith.constant 0 : index
    %c0_24 = arith.constant 0 : index
    %44 = vector.load %arg21[%c0_23, %c0_24] : memref<8x32xf32, #tpu.memory_space<vmem>>, vector<8x32xf32>
    tpu.vector_store %arg21[%c0_23, %c0_24], %43 {strides = array<i32>} : memref<8x32xf32, #tpu.memory_space<vmem>>, vector<8x32xf32>,
    %c3_i32 = arith.constant 3 : i32
    %45 = arith.cmpi eq, %arg2, %c3_i32 : i32
    %46 = arith.extui %45 : i1 to i32
    %c0_i32_25 = arith.constant 0 : i32
    %47 = arith.cmpi ne, %46, %c0_i32_25 : i32
    scf.if %47 {
      %c0_26 = arith.constant 0 : index
      %c0_27 = arith.constant 0 : index
      %48 = vector.load %arg21[%c0_26, %c0_27] : memref<8x32xf32, #tpu.memory_space<vmem>>, vector<8x32xf32>
      %c0_28 = arith.constant 0 : index
      %c0_29 = arith.constant 0 : index
      %49 = vector.load %arg11[%c0_28, %c0_29] : memref<1x32xf32, #tpu.memory_space<vmem>>, vector<1x32xf32>
      %50 = vector.broadcast %49 : vector<1x32xf32> to vector<8x32xf32>
      %51 = arith.addf %48, %50 : vector<8x32xf32>
      %52 = arith.addf %51, %7 : vector<8x32xf32>
      %c0_30 = arith.constant 0 : index
      %c0_31 = arith.constant 0 : index
      %53 = vector.load %arg16[%c0_30, %c0_31] : memref<1x32xf32, #tpu.memory_space<vmem>>, vector<1x32xf32>
      %c0_32 = arith.constant 0 : index
      %c0_33 = arith.constant 0 : index
      %54 = vector.load %arg17[%c0_32, %c0_33] : memref<1x32xf32, #tpu.memory_space<vmem>>, vector<1x32xf32>
      %cst_34 = arith.constant dense<0.000000e+00> : vector<8xf32>
      %55 = vector.multi_reduction <add>, %52, %cst_34 [1] : vector<8x32xf32> to vector<8xf32>
      %56 = vector.shape_cast %55 : vector<8xf32> to vector<8x1xf32>
      %cst_35 = arith.constant 3.200000e+01 : f32
      %57 = vector.broadcast %cst_35 : f32 to vector<8x1xf32>
      %58 = arith.divf %56, %57 : vector<8x1xf32>
      %59 = vector.broadcast %58 : vector<8x1xf32> to vector<8x32xf32>
      %60 = arith.subf %52, %59 : vector<8x32xf32>
      %61 = arith.mulf %60, %60 : vector<8x32xf32>
      %cst_36 = arith.constant dense<0.000000e+00> : vector<8xf32>
      %62 = vector.multi_reduction <add>, %61, %cst_36 [1] : vector<8x32xf32> to vector<8xf32>
      %63 = vector.shape_cast %62 : vector<8xf32> to vector<8x1xf32>
      %cst_37 = arith.constant 3.200000e+01 : f32
      %64 = vector.broadcast %cst_37 : f32 to vector<8x1xf32>
      %65 = arith.divf %63, %64 : vector<8x1xf32>
      %66 = vector.broadcast %58 : vector<8x1xf32> to vector<8x32xf32>
      %67 = arith.subf %52, %66 : vector<8x32xf32>
      %cst_38 = arith.constant 9.99999974E-6 : f32
      %68 = vector.broadcast %cst_38 : f32 to vector<8x1xf32>
      %69 = arith.addf %65, %68 : vector<8x1xf32>
      %70 = math.rsqrt %69 : vector<8x1xf32>
      %71 = vector.broadcast %70 : vector<8x1xf32> to vector<8x32xf32>
      %72 = arith.mulf %67, %71 : vector<8x32xf32>
      %73 = vector.broadcast %53 : vector<1x32xf32> to vector<8x32xf32>
      %74 = arith.mulf %72, %73 : vector<8x32xf32>
      %75 = vector.broadcast %54 : vector<1x32xf32> to vector<8x32xf32>
      %76 = arith.addf %74, %75 : vector<8x32xf32>
      %77 = arith.truncf %76 : vector<8x32xf32> to vector<8x32xbf16>
      %c0_39 = arith.constant 0 : index
      %c0_40 = arith.constant 0 : index
      %78 = vector.load %arg12[%c0_39, %c0_40] : memref<32x64xbf16, #tpu.memory_space<vmem>>, vector<32x64xbf16>
      %cst_41 = arith.constant dense<0.000000e+00> : vector<8x64xf32>
      %79 = tpu.matmul %77, %78, %cst_41 {dimension_numbers = #tpu.dot_dimension_numbers<[1], [0], [0], [1], [0, 0, 1, 1], [], []>} : vector<8x32xbf16>, vector<32x64xbf16>, vector<8x64xf32> -> vector<8x64xf32>
      %c0_42 = arith.constant 0 : index
      %c0_43 = arith.constant 0 : index
      %80 = vector.load %arg13[%c0_42, %c0_43] : memref<1x64xf32, #tpu.memory_space<vmem>>, vector<1x64xf32>
      %81 = vector.broadcast %80 : vector<1x64xf32> to vector<8x64xf32>
      %82 = arith.addf %79, %81 : vector<8x64xf32>
      %cst_44 = arith.constant 0.000000e+00 : f32
      %83 = vector.broadcast %cst_44 : f32 to vector<8x64xf32>
      %84 = arith.cmpf oge, %82, %83 : vector<8x64xf32>
      %cst_45 = arith.constant 0.00999999977 : f32
      %85 = vector.broadcast %cst_45 : f32 to vector<8x64xf32>
      %86 = arith.mulf %85, %82 : vector<8x64xf32>
      %87 = arith.select %84, %82, %86 : vector<8x64xi1>, vector<8x64xf32>
      %88 = arith.truncf %87 : vector<8x64xf32> to vector<8x64xbf16>
      %c0_46 = arith.constant 0 : index
      %c0_47 = arith.constant 0 : index
      %89 = vector.load %arg14[%c0_46, %c0_47] : memref<64x32xbf16, #tpu.memory_space<vmem>>, vector<64x32xbf16>
      %cst_48 = arith.constant dense<0.000000e+00> : vector<8x32xf32>
      %90 = tpu.matmul %88, %89, %cst_48 {dimension_numbers = #tpu.dot_dimension_numbers<[1], [0], [0], [1], [0, 0, 1, 1], [], []>} : vector<8x64xbf16>, vector<64x32xbf16>, vector<8x32xf32> -> vector<8x32xf32>
      %c0_49 = arith.constant 0 : index
      %c0_50 = arith.constant 0 : index
      %91 = vector.load %arg15[%c0_49, %c0_50] : memref<1x32xf32, #tpu.memory_space<vmem>>, vector<1x32xf32>
      %92 = vector.broadcast %91 : vector<1x32xf32> to vector<8x32xf32>
      %93 = arith.addf %90, %92 : vector<8x32xf32>
      %94 = arith.addf %93, %76 : vector<8x32xf32>
      %c0_51 = arith.constant 0 : index
      %c0_52 = arith.constant 0 : index
      %95 = vector.load %arg18[%c0_51, %c0_52] : memref<1x32xf32, #tpu.memory_space<vmem>>, vector<1x32xf32>
      %c0_53 = arith.constant 0 : index
      %c0_54 = arith.constant 0 : index
      %96 = vector.load %arg19[%c0_53, %c0_54] : memref<1x32xf32, #tpu.memory_space<vmem>>, vector<1x32xf32>
      %cst_55 = arith.constant dense<0.000000e+00> : vector<8xf32>
      %97 = vector.multi_reduction <add>, %94, %cst_55 [1] : vector<8x32xf32> to vector<8xf32>
      %98 = vector.shape_cast %97 : vector<8xf32> to vector<8x1xf32>
      %cst_56 = arith.constant 3.200000e+01 : f32
      %99 = vector.broadcast %cst_56 : f32 to vector<8x1xf32>
      %100 = arith.divf %98, %99 : vector<8x1xf32>
      %101 = vector.broadcast %100 : vector<8x1xf32> to vector<8x32xf32>
      %102 = arith.subf %94, %101 : vector<8x32xf32>
      %103 = arith.mulf %102, %102 : vector<8x32xf32>
      %cst_57 = arith.constant dense<0.000000e+00> : vector<8xf32>
      %104 = vector.multi_reduction <add>, %103, %cst_57 [1] : vector<8x32xf32> to vector<8xf32>
      %105 = vector.shape_cast %104 : vector<8xf32> to vector<8x1xf32>
      %cst_58 = arith.constant 3.200000e+01 : f32
      %106 = vector.broadcast %cst_58 : f32 to vector<8x1xf32>
      %107 = arith.divf %105, %106 : vector<8x1xf32>
      %108 = vector.broadcast %100 : vector<8x1xf32> to vector<8x32xf32>
      %109 = arith.subf %94, %108 : vector<8x32xf32>
      %cst_59 = arith.constant 9.99999974E-6 : f32
      %110 = vector.broadcast %cst_59 : f32 to vector<8x1xf32>
      %111 = arith.addf %107, %110 : vector<8x1xf32>
      %112 = math.rsqrt %111 : vector<8x1xf32>
      %113 = vector.broadcast %112 : vector<8x1xf32> to vector<8x32xf32>
      %114 = arith.mulf %109, %113 : vector<8x32xf32>
      %115 = vector.broadcast %95 : vector<1x32xf32> to vector<8x32xf32>
      %116 = arith.mulf %114, %115 : vector<8x32xf32>
      %117 = vector.broadcast %96 : vector<1x32xf32> to vector<8x32xf32>
      %118 = arith.addf %116, %117 : vector<8x32xf32>
      %c0_60 = arith.constant 0 : index
      %c0_61 = arith.constant 0 : index
      %c0_62 = arith.constant 0 : index
      %119 = vector.load %arg20[%c0_60, %c0_61, %c0_62] : memref<1x8x32xf32, #tpu.memory_space<vmem>>, vector<1x8x32xf32>
      %120 = vector.shape_cast %119 : vector<1x8x32xf32> to vector<8x32xf32>
      %121 = vector.shape_cast %118 : vector<8x32xf32> to vector<1x8x32xf32>
      tpu.vector_store %arg20[%c0_60, %c0_61, %c0_62], %121 {strides = array<i32>} : memref<1x8x32xf32, #tpu.memory_space<vmem>>, vector<1x8x32xf32>,
    } else {
    }
    return
  }
  func.func @transform_0(%arg0: i32, %arg1: i32, %arg2: i32) -> (i32, i32, i32) {
    %c0_i32 = arith.constant 0 : i32
    %c0_i32_0 = arith.constant 0 : i32
    return %arg0, %arg1, %c0_i32 : i32, i32, i32
  }
  func.func @transform_1(%arg0: i32, %arg1: i32, %arg2: i32) -> (i32, i32, i32) {
    %c0_i32 = arith.constant 0 : i32
    %c0_i32_0 = arith.constant 0 : i32
    %c0_i32_1 = arith.constant 0 : i32
    return %arg0, %c0_i32, %c0_i32_0 : i32, i32, i32
  }
  func.func @transform_2(%arg0: i32, %arg1: i32, %arg2: i32) -> (i32, i32, i32) {
    %c0_i32 = arith.constant 0 : i32
    %c0_i32_0 = arith.constant 0 : i32
    %c0_i32_1 = arith.constant 0 : i32
    return %arg0, %c0_i32, %c0_i32_0 : i32, i32, i32
  }
  func.func @transform_3(%arg0: i32, %arg1: i32, %arg2: i32) -> (i32, i32, i32) {
    %c0_i32 = arith.constant 0 : i32
    %c0_i32_0 = arith.constant 0 : i32
    return %arg0, %arg1, %c0_i32 : i32, i32, i32
  }
  func.func @transform_4(%arg0: i32, %arg1: i32, %arg2: i32) -> (i32, i32, i32) {
    %c0_i32 = arith.constant 0 : i32
    %c0_i32_0 = arith.constant 0 : i32
    %c0_i32_1 = arith.constant 0 : i32
    %c0_i32_2 = arith.constant 0 : i32
    return %c0_i32, %c0_i32_0, %c0_i32_1 : i32, i32, i32
  }
  func.func @transform_5(%arg0: i32, %arg1: i32, %arg2: i32) -> (i32, i32, i32) {
    %c0_i32 = arith.constant 0 : i32
    %c0_i32_0 = arith.constant 0 : i32
    %c0_i32_1 = arith.constant 0 : i32
    %c0_i32_2 = arith.constant 0 : i32
    return %c0_i32, %c0_i32_0, %c0_i32_1 : i32, i32, i32
  }
  func.func @transform_6(%arg0: i32, %arg1: i32, %arg2: i32) -> (i32, i32, i32) {
    %c0_i32 = arith.constant 0 : i32
    %c0_i32_0 = arith.constant 0 : i32
    %c0_i32_1 = arith.constant 0 : i32
    %c0_i32_2 = arith.constant 0 : i32
    return %c0_i32, %c0_i32_0, %c0_i32_1 : i32, i32, i32
  }
  func.func @transform_7(%arg0: i32, %arg1: i32, %arg2: i32) -> (i32, i32, i32) {
    %c0_i32 = arith.constant 0 : i32
    %c0_i32_0 = arith.constant 0 : i32
    %c0_i32_1 = arith.constant 0 : i32
    %c0_i32_2 = arith.constant 0 : i32
    return %c0_i32, %c0_i32_0, %c0_i32_1 : i32, i32, i32
  }
  func.func @transform_8(%arg0: i32, %arg1: i32, %arg2: i32) -> (i32, i32) {
    %c0_i32 = arith.constant 0 : i32
    %c0_i32_0 = arith.constant 0 : i32
    %c0_i32_1 = arith.constant 0 : i32
    return %c0_i32, %c0_i32_0 : i32, i32
  }
  func.func @transform_9(%arg0: i32, %arg1: i32, %arg2: i32) -> (i32, i32) {
    %c0_i32 = arith.constant 0 : i32
    %c0_i32_0 = arith.constant 0 : i32
    %c0_i32_1 = arith.constant 0 : i32
    return %c0_i32, %c0_i32_0 : i32, i32
  }
  func.func @transform_10(%arg0: i32, %arg1: i32, %arg2: i32) -> (i32, i32) {
    %c0_i32 = arith.constant 0 : i32
    %c0_i32_0 = arith.constant 0 : i32
    %c0_i32_1 = arith.constant 0 : i32
    return %c0_i32, %c0_i32_0 : i32, i32
  }
  func.func @transform_11(%arg0: i32, %arg1: i32, %arg2: i32) -> (i32, i32) {
    %c0_i32 = arith.constant 0 : i32
    %c0_i32_0 = arith.constant 0 : i32
    %c0_i32_1 = arith.constant 0 : i32
    return %c0_i32, %c0_i32_0 : i32, i32
  }
  func.func @transform_12(%arg0: i32, %arg1: i32, %arg2: i32) -> (i32, i32) {
    %c0_i32 = arith.constant 0 : i32
    %c0_i32_0 = arith.constant 0 : i32
    %c0_i32_1 = arith.constant 0 : i32
    return %c0_i32, %c0_i32_0 : i32, i32
  }
  func.func @transform_13(%arg0: i32, %arg1: i32, %arg2: i32) -> (i32, i32) {
    %c0_i32 = arith.constant 0 : i32
    %c0_i32_0 = arith.constant 0 : i32
    %c0_i32_1 = arith.constant 0 : i32
    return %c0_i32, %c0_i32_0 : i32, i32
  }
  func.func @transform_14(%arg0: i32, %arg1: i32, %arg2: i32) -> (i32, i32) {
    %c0_i32 = arith.constant 0 : i32
    %c0_i32_0 = arith.constant 0 : i32
    %c0_i32_1 = arith.constant 0 : i32
    return %c0_i32, %c0_i32_0 : i32, i32
  }
  func.func @transform_15(%arg0: i32, %arg1: i32, %arg2: i32) -> (i32, i32) {
    %c0_i32 = arith.constant 0 : i32
    %c0_i32_0 = arith.constant 0 : i32
    %c0_i32_1 = arith.constant 0 : i32
    return %c0_i32, %c0_i32_0 : i32, i32
  }
  func.func @transform_16(%arg0: i32, %arg1: i32, %arg2: i32) -> (i32, i32) {
    %c0_i32 = arith.constant 0 : i32
    %c0_i32_0 = arith.constant 0 : i32
    %c0_i32_1 = arith.constant 0 : i32
    return %c0_i32, %c0_i32_0 : i32, i32
  }
  func.func @transform_17(%arg0: i32, %arg1: i32, %arg2: i32) -> (i32, i32, i32) {
    %c0_i32 = arith.constant 0 : i32
    %c0_i32_0 = arith.constant 0 : i32
    return %arg0, %arg1, %c0_i32 : i32, i32, i32
  }
}

</mosaic_0001>

<bundles_post_ra>
// kernel: tpu_custom_call.1
= control target key start
LH: loop header
LB: loop body
LE: loop exit
PB: predicated region body
PF: predicated region fallthrough
CT: control target
= control target key end

     0   :  { %s2077_s0 = inlined_call_operand.vmem [shape: f32[2,8,32], index: 0, kind: input, shape index: {}]   ;;  %s2078_s1 = inlined_call_operand.vmem [shape: bf16[2,8,32], index: 1, kind: input, shape index: {}]   ;;  %s2079_s2 = inlined_call_operand.vmem [shape: bf16[2,8,32], index: 2, kind: input, shape index: {}]   ;;  %s2080_s3 = inlined_call_operand.vmem [shape: bf16[2,8,8], index: 3, kind: input, shape index: {}]   ;;  %s2081_s4 = inlined_call_operand.vmem [shape: bf16[4,32,8], index: 4, kind: input, shape index: {}]   ;;  %s2082_s5 = inlined_call_operand.vmem [shape: bf16[4,32,8], index: 5, kind: input, shape index: {}]   ;;  %s2083_s6 = inlined_call_operand.vmem [shape: bf16[4,32,8], index: 6, kind: input, shape index: {}]   ;;  %s2084_s7 = inlined_call_operand.vmem [shape: bf16[4,8,32], index: 7, kind: input, shape index: {}]   ;;  %s2085_s8 = inlined_call_operand.vmem [shape: f32[1,32], index: 8, kind: input, shape index: {}]   ;;  %s2086_s9 = inlined_call_operand.vmem [shape: bf16[32,64], index: 9, kind: input, shape index: {}]   ;;  %s2087_s10 = inlined_call_operand.vmem [shape: f32[1,64], index: 10, kind: input, shape index: {}]   ;;  %s2088_s11 = inlined_call_operand.vmem [shape: bf16[64,32], index: 11, kind: input, shape index: {}]   ;;  %s2089_s12 = inlined_call_operand.vmem [shape: f32[1,32], index: 12, kind: input, shape index: {}]   ;;  %s2090_s13 = inlined_call_operand.vmem [shape: f32[1,32], index: 13, kind: input, shape index: {}]   ;;  %s2091_s14 = inlined_call_operand.vmem [shape: f32[1,32], index: 14, kind: input, shape index: {}]   ;;  %s2092_s15 = inlined_call_operand.vmem [shape: f32[1,32], index: 15, kind: input, shape index: {}]   ;;  %s2093_s16 = inlined_call_operand.vmem [shape: f32[1,32], index: 16, kind: input, shape index: {}]   ;;  %s2094_s17 = inlined_call_operand.hbm [shape: f32[2,8,32], index: 17, kind: output, shape index: {}]  }
   0x1   :  { %2109 = sst [smem:[#allocation20_spill]] %s2077_s0 }
   0x2   :  { %2110 = sst [smem:[#allocation21_spill]] %s2078_s1 }
   0x3   :  { %2111 = sst [smem:[#allocation22_spill]] %s2089_s12 }
   0x4   :  { %2112 = sst [smem:[#allocation23_spill]] %s2092_s15 }
   0x5   :  { %2113 = sst [smem:[#allocation24_spill]] %s2093_s16 }
   0x6   :  { %2114 = sst [smem:[#allocation25_spill]] %s2094_s17 }
   0x7   :  { %22 = vsyncpa [#allocation6], 0 }
   0x8   :  { %24 = vsyncpa [#allocation6 + $0x1], 0  ;;  %s1822_s24 = smov 0   ;;  %s1824_s25 = smov 0  }
   0x9   :  { %s1826_s26 = smov 0   ;;  %s1828_s27 = smov 0  }
   0xa   :  { %s1830_s28 = smov 0   ;;  %s1832_s29 = smov 0  }
   0xb   :  { %s1834_s0 = smov 0   ;;  %s1836_s30 = smov 0  }
   0xc LB: > { %2115 = sst [smem:[#allocation8_spill]] %s1696_s24  ;;  %s1393_s18 = sadd.s32 4294967295, %s1724_s30   ;;  %s1724_s30 = sphi %s1836_s30, %s30_s30   ;;  %s1720_s0 = sphi %s1834_s0, %s2149_s0   ;;  %s1716_s29 = sphi %s1832_s29, %s2148_s29   ;;  %s1712_s28 = sphi %s1830_s28, %s2147_s28   ;;  %s1708_s27 = sphi %s1828_s27, %s2146_s27   ;;  %s1704_s26 = sphi %s1826_s26, %s2145_s26   ;;  %s1700_s25 = sphi %s1824_s25, %s2144_s25   ;;  %s1696_s24 = sphi %s1822_s24, %s2143_s24  }
   0xd   : > { %2116 = sst [smem:[#allocation9_spill]] %s1700_s25  ;;  %s1394_s19 = sadd.s32 4294967294, %s1724_s30  }
   0xe   : > { %2117 = sst [smem:[#allocation10_spill]] %s1704_s26  ;;  %s42_s1 = sadd.s32 1, %s1716_s29 }
   0xf   : > { %2118 = sst [smem:[#allocation11_spill]] %s1712_s28  ;;  %p43_p0 = scmp.ge.s32.totalorder %s42_s1, 4 }
  0x10   : > { %2119 = sst [smem:[#allocation12_spill]] %s1716_s29  ;;  %s49_s20 = sadd.s32 1, %s1720_s0 }
  0x11   : > { %2120 = sst [smem:[#allocation13_spill]] %s1720_s0  ;;  %p449_p1 = scmp.ne.s32.totalorder %s1704_s26, %s1700_s25 }
  0x12   : > { %2121 = sst [smem:[#allocation14_spill]] %s1724_s30  ;;  %p450_p2 = scmp.eq.s32.totalorder %s1393_s18, 7 }
  0x13   : > { %s2151_s1 = smov (%p43_p0, %s42_s1), 0  ;;  %s2153_s20 = smov (!%p43_p0, %s49_s20), %s1720_s0 }
  0x14   : > { %2122 = sst [smem:[#allocation15_spill]] %s2151_s1  ;;  %p1871_p3 = por %p450_p2, %p449_p1 }
  0x15   : > { %p455_p4 = scmp.ne.s32.totalorder %s1700_s25, %s1696_s24  ;;  %p51_p5 = scmp.ge.s32.totalorder %s2153_s20, 2 }
  0x16   : > { %s2123_s21 = scalar_select %p1871_p3, 1, 0 }
  0x17   : > { %p456_p6 = scmp.eq.s32.totalorder %s1394_s19, 7  ;;  %p1397_p7 = scmp.ge.s32.totalorder %s1724_s30, 1 }
  0x18   : > { %2124 = sst [smem:[#allocation16_spill]] %s2123_s21  ;;  %p547_p8 = scmp.lt.s32.totalorder %s1724_s30, 9 }
  0x19   : > { %s2155_s20 = smov (%p51_p5, %s2153_s20), 0  ;;  %p1881_p9 = por %p456_p6, %p455_p4 }
  0x1a   : > { %2125 = sst [smem:[#allocation17_spill]] %s2155_s20  ;;  %p548_p10 = pnand %p1397_p7, %p547_p8 }
  0x1b   : > { %s2126_s22 = scalar_select %p1881_p9, 1, 0 }
  0x1c   : > { %s434_s23 = ssub.s32 %s1720_s0, %s2155_s20  ;;  %s439_s18 = sadd.s32 1, %s1704_s26 }
  0x1d   : > { %2127 = sst [smem:[#allocation18_spill]] %s2126_s22  ;;  %p437_p11 = scmp.eq.s32.totalorder %s434_s23, 0 }
  0x1e   : > { %551 = sbr.rel (%p548_p10) target bundleno = 2345 (0x929), region = 88  ;;  %s2107_s19 = sand.u32 (!%p548_p10), 1, %s1700_s25  }
  0x1f   : > { %s1889_s1 = scalar_select %p437_p11, %s1704_s26, %s439_s18  }
  0x20   : > { %p616_p12 = scmp.lt.s32.totalorder (!%p548_p10), %s1712_s28, 1  ;;  %s1895_s29 = sshll.u32 (!%p548_p10), %s2107_s19, 3 }
  0x21   : > { %2128 = sst [smem:[#allocation19_spill]] %s1889_s1  ;;  %s2129_s23 = sld [smem:[#allocation20_spill]] (!%p548_p10) }
  0x22   : > { %s2130_s17 = sld [smem:[#allocation21_spill]] (!%p548_p10)  ;;  %s615_s12 = scalar_lea.vmem (!%p548_p10), [#allocation5], %s1895_s29 }
  0x23   : > { %p1403_p13 = scmp.ne.s32.totalorder (!%p548_p10), %s1708_s27, 0 }
  0x25   : > { %s617_s24 = scalar_select %p616_p12, %s1712_s28, 1 }
  0x26   : > { %642 = sbr.rel (%p1403_p13) target bundleno = 45 (0x2d), region = 92  ;;  %vm643_vm0 = vcmask (!%p1403_p13), 261120   ;;  %v1726_v0 = vmov (!%p1403_p13), 0.0  }
  0x27   : > { %s1399_s30 = sshll.u32 %s617_s24, 3  ;;  %s1898_s22 = sshll.u32 %s617_s24, 2  ;;  %644 = vst.msk [vmem:[#allocation2] sm:$0xff] (!%p1403_p13), %vm643_vm0, %v1726_v0 }
  0x28   : > { %s1903_s18 = scalar_lea.vmem %s2129_s23, %s1399_s30  ;;  %s626_s21 = scalar_lea.vmem %s2130_s17, %s1898_s22 }
  0x29   : > { %s630_s16 = scalar_lea.vmem %s2079_s2, %s1898_s22  ;;  %s637_s24 = scalar_lea.vmem %s2080_s3, %s1898_s22 }
  0x2d PF: > { %s1446_s0 = sshll.u32 %s1708_s27, 4  ;;  %v1727_v1 = vmov 0.0   ;;  %vm1728_vm1 = vmmov 0   ;;  %v649_v5 = vld [vmem:[%s626_s21] sm:$0xf]  ;;  %vm670_vm2 = vcmask 261120  }
  0x2e   : > { %1472 = vmatprep.subr.bf16.mxu0 %v1727_v1  ;;  %s653_s25 = scalar_lea.vmem %s2082_s5, %s1446_s0  ;;  %1476 = vmatprep.mubr.msk.bf16.mxu0 %vm1728_vm1, %v1727_v1  ;;  %s788_s30 = scalar_lea.vmem %s2081_s4, %s1446_s0  ;;  %v1934_v8 = vld [vmem:[%s1903_s18] sm:$0xff]  ;;  %vm717_vm3 = vcmask 60416   ;;  %vm858_vm4 = vcmask 64512   ;;  %vm920_vm5 = vcmask 1043456  }
  0x2f   : > { %v1610_v2 = vld [vmem:[%s653_s25] sm:$0xff]   ;;  %1480 = vmatprep.subr.bf16.mxu1 %v1727_v1  ;;  %1484 = vmatprep.mubr.msk.bf16.mxu1 %vm1728_vm1, %v1727_v1  ;;  %s720_s19 = scalar_lea.vmem %s2083_s6, %s1446_s0  ;;  %v1611_v3 = vld [vmem:[%s653_s25 + $0x8] sm:$0xff]   ;;  %v785_v9 = vpack.c.bf16 %v1934_v8, %v1934_v8  ;;  %s1948_s18 = sshll.u32 %s1708_s27, 2 }
  0x30   : > { %1473 = vmatpush3.bf16.msra.mxu0 %v1610_v2  ;;  %v1614_v4 = vld [vmem:[%s720_s19] sm:$0xff]   ;;  %v1613_v7 = vld [vmem:[%s788_s30 + $0x8] sm:$0xff]   ;;  %s716_s0 = scalar_lea.vmem [#allocation3], %s1948_s18  ;;  %s967_s25 = scalar_lea.vmem %s2084_s7, %s1948_s18 }
  0x31   : > { %1474 = vmatprep.subr.bf16.mxu0 %v1727_v1  ;;  %v1612_v6 = vld [vmem:[%s788_s30] sm:$0xff]   ;;  %1481 = vmatpush3.bf16.msra.mxu1 %v1614_v4  ;;  %v1615_v10 = vld [vmem:[%s720_s19 + $0x8] sm:$0xff]   ;;  %p1426_p0 = scmp.ne.s32.totalorder %s1708_s27, 3 }
  0x32   : > { %1482 = vmatprep.subr.bf16.mxu1 %v1727_v1  ;;  %v650_v11 = vld [vmem:[%s630_s16] sm:$0xf]  ;;  %s782_s16 = scalar_lea.vmem [#allocation4], %s1948_s18  ;;  %vm1730_vm6 = vmmov (!%p1426_p0), 0   ;;  %vm1171_vm8 = vcmask (!%p1426_p0), 523264   ;;  %s2131_s20 = sld [smem:[#allocation22_spill]] (!%p1426_p0) }
  0x33   : > { %v856_v31 = vld [vmem:[%s637_s24] sm:$0xf]  ;;  %s2132_s23 = sld [smem:[#allocation23_spill]] (!%p1426_p0) }
  0x34   : > { %1475 = vmatpush3.bf16.msra.mxu0 %v1611_v3  ;;  %v857_v32 = vunpack.c.l.bf16 %v856_v31  ;;  %v968_v44 = vld [vmem:[%s967_s25] sm:$0xf] }
  0x35   : > { %1488 = vmatprep.subr.bf16.mxu0 %v1727_v1  ;;  %1483 = vmatpush3.bf16.msra.mxu1 %v1615_v10  ;;  %v973_v45 = vsel %vm920_vm5, %v968_v44, 0  ;;  %v964_v55 = vld [vmem:[#allocation2] sm:$0xff] }
  0x36   : > { %1496 = vmatprep.subr.bf16.mxu1 %v1727_v1  ;;  %v1427_v62 = vld [vmem:[%s2085_s8] ss:$0 sm:$0xff] (!%p1426_p0) }
  0x37   : > { %1477 = vmatmul.mubr.msk.bf16.vlgmr.msra.gmra.mrb[0].mxu0 %vm670_vm2, %v649_v5  ;;  %v1622_v10 = vld [vmem:[%s2088_s11] sm:$0xff] (!%p1426_p0)  }
  0x38   : > { %1489 = vmatpush3.bf16.msra.mxu0 %v1612_v6  ;;  %1492 = vmatprep.mubr.msk.bf16.mxu0 %vm1728_vm1, %v1727_v1 }
  0x39   : > { %1490 = vmatprep.subr.bf16.mxu0 %v1727_v1  ;;  %1485 = vmatmul.mubr.msk.bf16.vlgmr.msra.gmra.mrb[0].mxu1 %vm670_vm2, %v650_v11  ;;  %v1623_v11 = vld [vmem:[%s2088_s11 + $0x8] sm:$0xff] (!%p1426_p0)  }
  0x3a   : > { %1498 = vmatprep.mubr.msk.bf16.mxu1 %vm1728_vm1, %v1727_v1 }
  0x3c   : > { %1491 = vmatpush3.bf16.msra.mxu0 %v1613_v7  ;;  %v1620_v7 = vld [vmem:[%s2086_s9] sm:$0xff] (!%p1426_p0)  }
  0x3d   : > { %1502 = vmatprep.subr.bf16.mxu0 %v1727_v1 }
  0x3f   : > { %1493 = vmatmul.mubr.msk.bf16.vlgmr.msra.gmra.mrb[4].mxu0 %vm670_vm2, %v785_v9  ;;  %v1729_v9 = vmov (!%p1426_p0), 0.0  }
  0x40   : > { %1504 = vmatprep.mubr.msk.bf16.mxu0 %vm1728_vm1, %v1727_v1 }
 0x10a   : > { %v708_v12 = vpop.f32.mrb[0].mxu0 }
 0x10b   : > { %v714_v13 = vpack.c.bf16 %v708_v12, %v708_v12  ;;  %v1478_v14 = vpop.f32.mrb[1].mxu0 }
 0x10c   : > { %v711_v15 = vpop.f32.mrb[2].mxu0  ;;  %v774_v24 = vpop.f32.mrb[0].mxu1 }
 0x10d   : > { %718 = vst.msk [vmem:[%s716_s0] sm:$0xf] %vm717_vm3, %v714_v13  ;;  %v1479_v16 = vpop.f32.mrb[3].mxu0  ;;  %v780_v25 = vpack.c.bf16 %v774_v24, %v774_v24  ;;  %v1486_v26 = vpop.f32.mrb[1].mxu1  ;;  %v1430_v24 = vld [vmem:[%s2087_s10] ss:$0 sm:$0xff] (!%p1426_p0) }
 0x10e   : > { %v777_v27 = vpop.f32.mrb[2].mxu1  ;;  %v1428_v16 = vld [vmem:[%s2090_s13] ss:$0 sm:$0xff] (!%p1426_p0) }
 0x10f   : > { %783 = vst.msk [vmem:[%s782_s16] sm:$0xf] %vm717_vm3, %v780_v25  ;;  %v1487_v28 = vpop.f32.mrb[3].mxu1 }
 0x112   : > { %v843_v17 = vpop.f32.mrb[4].mxu0 }
 0x113   : > { %v1494_v18 = vpop.f32.mrb[5].mxu0  ;;  %v855_v23 = vpack.c.bf16 %v843_v17, %v843_v17 }
 0x114   : > { %v851_v19 = vld [vmem:[%s716_s0] sm:$0xf]  ;;  %v846_v20 = vpop.f32.mrb[6].mxu0 }
 0x115   : > { %v863_v21 = vsel %vm858_vm4, %v851_v19, 0  ;;  %v1495_v22 = vpop.f32.mrb[7].mxu0  ;;  %v1429_v18 = vld [vmem:[%s2091_s14] ss:$0 sm:$0xff] (!%p1426_p0) }
 0x116   : > { %1497 = vmatpush3.bf16.xpose.msra.mxu1 %v863_v21  ;;  %v854_v29 = vld [vmem:[%s782_s16] sm:$0xf]  ;;  %v1624_v22 = vld [vmem:[%s2088_s11 + $0x10] sm:$0xff] (!%p1426_p0)   ;;  %s2133_s16 = sld [smem:[#allocation24_spill]] (!%p1426_p0) }
 0x117   : > { %1508 = vmatprep.subr.bf16.mxu1 %v1727_v1  ;;  %v922_v30 = vsel %vm920_vm5, %v854_v29, 0 }
 0x118   : > { %1503 = vmatpush3.bf16.msra.mxu0 %v922_v30 }
 0x119   : > { %1514 = vmatprep.subr.bf16.mxu0 (!%p1426_p0), %v1729_v9 }
 0x11d   : > { %1499 = vmatmul.mubr.msk.bf16.vlgmr.msra.gmra.mrb[4].mxu1 %vm858_vm4, %v855_v23  ;;  %v1625_v23 = vld [vmem:[%s2088_s11 + $0x18] sm:$0xff] (!%p1426_p0)  }
 0x11e   : > { %1510 = vmatprep.mubr.msk.bf16.mxu1 %vm1728_vm1, %v1727_v1  ;;  %1509 = vmatpush3.bf16.msra.mxu1 %v973_v45 }
 0x11f   : > { %1522 = vmatprep.subr.bf16.mxu1 (!%p1426_p0), %v1729_v9 }
 0x1f0   : > { %v899_v33 = vpop.f32.mrb[4].mxu1 }
 0x1f1   : > { %v900_v34 = vadd.f32 %v899_v33, %v857_v32  ;;  %v1500_v35 = vpop.f32.mrb[5].mxu1  ;;  %v1434_v33 = vld [vmem:[%s2131_s20] ss:$0 sm:$0xff] (!%p1426_p0) }
 0x1f2   : > { %v902_v36 = vpop.f32.mrb[6].mxu1 }
 0x1f3   : > { %v1501_v37 = vpop.f32.mrb[7].mxu1  ;;  %v905_v38 = vsel %vm858_vm4, %v900_v34, -inf }
 0x1f4   : > { %906 = vmax.xlane.f32.xlu0 %v905_v38 }
 0x281   : > { %v907_v39 = vpop.xlane.xlu0 %906 }
 0x282   : > { %v908_v40 = vsub.f32 %v900_v34, %v907_v39 }
 0x284   : > { %v909_v41 = vmul.f32 1.442695, %v908_v40 }
 0x286   : > { %1616 = vpow2.f32 %v909_v41 }
 0x290   : > { %v1617_v42 = vpop.eup %1616 }
 0x291   : > { %v911_v43 = vsel %vm858_vm4, %v1617_v42, 0.0 }
 0x292   : > { %912 = vadd.xlane.f32.xlu0 %v911_v43 }
 0x31f   : > { %v913_v46 = vpop.xlane.xlu0 %912 }
 0x320   : > { %1618 = vrcp.f32 %v913_v46 }
 0x32a   : > { %v1619_v47 = vpop.eup %1618 }
 0x32b   : > { %v915_v48 = vmul.f32 %v1619_v47, %v1617_v42 }
 0x32d   : > { %v916_v49 = vpack.c.bf16 %v915_v48, %v915_v48 }
 0x32f   : > { %1505 = vmatmul.mubr.msk.bf16.vlgmr.msra.gmra.mrb[8].mxu0 %vm858_vm4, %v916_v49 }
 0x330   : > { %1518 = vmatprep.mubr.msk.bf16.mxu0 (!%p1426_p0), %vm1730_vm6, %v1729_v9  ;;  %1515 = vmatpush3.bf16.msra.mxu0 (!%p1426_p0), %v1620_v7 }
 0x331   : > { %1516 = vmatprep.subr.bf16.mxu0 (!%p1426_p0), %v1729_v9 }
 0x402   : > { %v958_v50 = vpop.f32.mrb[8].mxu0 }
 0x403   : > { %v965_v51 = vpack.c.bf16 %v958_v50, %v958_v50  ;;  %v1506_v52 = vpop.f32.mrb[9].mxu0  ;;  %v1440_v50 = vld [vmem:[%s2132_s23] ss:$0 sm:$0xff] (!%p1426_p0) }
 0x404   : > { %v961_v53 = vpop.f32.mrb[10].mxu0  ;;  %v1441_v52 = vld [vmem:[%s2133_s16] ss:$0 sm:$0xff] (!%p1426_p0) }
 0x405   : > { %v1507_v54 = vpop.f32.mrb[11].mxu0  ;;  %1511 = vmatmul.mubr.msk.bf16.vlgmr.msra.gmra.mrb[8].mxu1 %vm858_vm4, %v965_v51 }
 0x406   : > { %1530 = vmatprep.mubr.msk.bf16.mxu1 (!%p1426_p0), %vm1730_vm6, %v1729_v9  ;;  %1523 = vmatpush3.bf16.msra.mxu1 (!%p1426_p0), %v1622_v10 }
 0x407   : > { %1524 = vmatprep.subr.bf16.mxu1 (!%p1426_p0), %v1729_v9 }
 0x40a   : > { %1525 = vmatpush3.bf16.msra.mxu1 (!%p1426_p0), %v1623_v11 }
 0x40b   : > { %1526 = vmatprep.subr.bf16.mxu1 (!%p1426_p0), %v1729_v9 }
 0x40e   : > { %1527 = vmatpush3.bf16.msra.mxu1 (!%p1426_p0), %v1624_v22 }
 0x40f   : > { %1528 = vmatprep.subr.bf16.mxu1 (!%p1426_p0), %v1729_v9 }
 0x412   : > { %1529 = vmatpush3.bf16.msra.mxu1 (!%p1426_p0), %v1625_v23 }
 0x4d5   : > { %1020 = sbr.rel (%p1426_p0) target bundleno = 2319 (0x90f), region = 100 }
 0x4d8   : > { %v1009_v56 = vpop.f32.mrb[8].mxu1 }
 0x4d9   : > { %v1015_v57 = vadd.f32 %v1009_v56, %v964_v55  ;;  %v1512_v58 = vpop.f32.mrb[9].mxu1 }
 0x4da   : > { %v1012_v59 = vpop.f32.mrb[10].mxu1 }
 0x4db   : > { %1016 = vst.msk [vmem:[#allocation2] sm:$0xff] %vm670_vm2, %v1015_v57  ;;  %v1513_v60 = vpop.f32.mrb[11].mxu1 }
 0x4e2   : > { %v1021_v61 = vld [vmem:[#allocation2] sm:$0xff] }
 0x4e3   : > { %v1029_v63 = vadd.f32 %v1427_v62, %v1021_v61 }
 0x4e5   : > { %v1030_v0 = vadd.f32 %v1029_v63, %v1934_v8  ;;  %v1621_v8 = vld [vmem:[%s2086_s9 + $0x8] sm:$0xff]  }
 0x4e6   : > { %1517 = vmatpush3.bf16.msra.mxu0 %v1621_v8 }
 0x4e7   : > { %v1033_v1 = vsel %vm670_vm2, %v1030_v0, 0.0 }
 0x4e8   : > { %1034 = vadd.xlane.f32.xlu0 %v1033_v1 }
 0x575   : > { %v1035_v2 = vpop.xlane.xlu0 %1034 }
 0x576   : > { %v1037_v3 = vmul.f32 0.03125, %v1035_v2 }
 0x578   : > { %v1038_v4 = vsub.f32 %v1030_v0, %v1037_v3 }
 0x57a   : > { %v1039_v5 = vmul.f32 %v1038_v4, %v1038_v4 }
 0x57c   : > { %v1040_v6 = vsel %vm670_vm2, %v1039_v5, 0.0 }
 0x57d   : > { %1041 = vadd.xlane.f32.xlu0 %v1040_v6 }
 0x60a   : > { %v1042_v12 = vpop.xlane.xlu0 %1041 }
 0x60b   : > { %v1043_v13 = vmul.f32 0.03125, %v1042_v12 }
 0x60d   : > { %v1044_v14 = vadd.f32 1e-05, %v1043_v13 }
 0x60f   : > { %1626 = vrsqrt.f32 %v1044_v14 }
 0x619   : > { %v1627_v15 = vpop.eup %1626 }
 0x61a   : > { %v1046_v17 = vmul.f32 %v1627_v15, %v1038_v4 }
 0x61c   : > { %v1053_v19 = vmul.f32 %v1428_v16, %v1046_v17 }
 0x61e   : > { %v1060_v20 = vadd.f32 %v1429_v18, %v1053_v19 }
 0x620   : > { %v1061_v21 = vpack.c.bf16 %v1060_v20, %v1060_v20 }
 0x622   : > { %1519 = vmatmul.mubr.msk.bf16.vlgmr.msra.gmra.mrb[0].mxu0 %vm670_vm2, %v1061_v21 }
 0x6f5   : > { %v1122_v25 = vpop.f32.mrb[0].mxu0 }
 0x6f6   : > { %v1123_v26 = vadd.f32 %v1430_v24, %v1122_v25  ;;  %v1520_v27 = vpop.f32.mrb[1].mxu0 }
 0x6f7   : > { %v1125_v28 = vpop.f32.mrb[2].mxu0 }
 0x6f8   : > { %vm1128_vm7 = vcmp.ge.f32.partialorder %v1123_v26, 0.0  ;;  %v1129_v29 = vmul.f32 0.01, %v1123_v26  ;;  %v1521_v30 = vpop.f32.mrb[3].mxu0 }
 0x6fa   : > { %v1130_v31 = vsel %vm1128_vm7, %v1123_v26, %v1129_v29 }
 0x6fb   : > { %v1131_v32 = vpack.c.bf16 %v1130_v31, %v1130_v31 }
 0x6fd   : > { %1531 = vmatmul.mubr.msk.bf16.vlgmr.msra.gmra.mrb[0].mxu1 %vm1171_vm8, %v1131_v32 }
 0x7d0   : > { %v1209_v34 = vpop.f32.mrb[0].mxu1 }
 0x7d1   : > { %v1210_v35 = vadd.f32 %v1434_v33, %v1209_v34  ;;  %v1532_v36 = vpop.f32.mrb[1].mxu1 }
 0x7d2   : > { %v1212_v37 = vpop.f32.mrb[2].mxu1 }
 0x7d3   : > { %v1533_v38 = vpop.f32.mrb[3].mxu1  ;;  %v1215_v39 = vadd.f32 %v1210_v35, %v1060_v20 }
 0x7d5   : > { %v1218_v40 = vsel %vm670_vm2, %v1215_v39, 0.0 }
 0x7d6   : > { %1219 = vadd.xlane.f32.xlu1 %v1218_v40 }
 0x863   : > { %v1220_v41 = vpop.xlane.xlu1 %1219 }
 0x864   : > { %v1221_v42 = vmul.f32 0.03125, %v1220_v41 }
 0x866   : > { %v1222_v43 = vsub.f32 %v1215_v39, %v1221_v42 }
 0x868   : > { %v1223_v44 = vmul.f32 %v1222_v43, %v1222_v43 }
 0x86a   : > { %v1224_v45 = vsel %vm670_vm2, %v1223_v44, 0.0 }
 0x86b   : > { %1225 = vadd.xlane.f32.xlu1 %v1224_v45 }
 0x8f8   : > { %v1226_v46 = vpop.xlane.xlu1 %1225 }
 0x8f9   : > { %v1227_v47 = vmul.f32 0.03125, %v1226_v46 }
 0x8fb   : > { %v1228_v48 = vadd.f32 1e-05, %v1227_v47 }
 0x8fd   : > { %1628 = vrsqrt.f32 %v1228_v48 }
 0x907   : > { %v1629_v49 = vpop.eup %1628 }
 0x908   : > { %v1230_v51 = vmul.f32 %v1629_v49, %v1222_v43 }
 0x90a   : > { %v1237_v53 = vmul.f32 %v1440_v50, %v1230_v51 }
 0x90c   : > { %v1244_v54 = vadd.f32 %v1441_v52, %v1237_v53 }
 0x90e   : > { %1245 = vst.msk [vmem:[%s615_s12] sm:$0xff] %vm670_vm2, %v1244_v54 }
 0x90f PF: > { %s2134_s17 = sld [smem:[#allocation11_spill]]  ;;  %s2137_s28 = sld [smem:[#allocation25_spill]] }
 0x910   : > { %s2135_s26 = sld [smem:[#allocation9_spill]]  ;;  %s1261_s30 = sshll.u32 %s615_s12, 4  ;;  %s1262_s30 = int_to_ptr.vmem [resolvable:$true] %s1261_s30 }
 0x911   : > { %s1630_s21 = scalar_lea.vmem %s1262_s30, 128  ;;  %s1731_s23 = smov [#allocation5]  }
 0x912   : > { %p1631_p1 = scmp.ne.s32.totalorder %s1262_s30, %s1630_s21  ;;  %s1634_s18 = sshll.u32 %s1731_s23, 4  ;;  %s1635_s18 = int_to_ptr.vmem [resolvable:$false] %s1634_s18 }
 0x913   : > { %s1636_s0 = scalar_lea.vmem %s1635_s18, 256  ;;  %p1637_p5 = scmp.lt.s32.totalorder %s1262_s30, %s1635_s18 }
 0x914   : > { %p1632_p2 = pnand %p1631_p1, %p1871_p3  ;;  %p1638_p6 = scmp.lt.s32.totalorder %s1636_s0, %s1630_s21 }
 0x915   : > { %s1443_s24 = sshll.u32 %s2134_s17, 7  ;;  %s2138_s1 = smov %s2137_s28 }
 0x916   : > { %s2026_s27 = scalar_lea.hbm %s2137_s28, %s1443_s24  ;;  %s2139_s20 = sand.u32 1, %s2135_s26  }
 0x917   : > { %s1247_s19 = scalar_lea.sflag [#allocation6], %s2139_s20  ;;  %p1633_p4 = pneg %p1632_p2 }
 0x918   : > { %p1639_p7 = por %p1638_p6, %p1637_p5 }
 0x91a   : > { %p1640_p8 = pnand %p1639_p7, %p1633_p4 }
 0x91c   : > { %1643 = shalt.err (!%p1640_p8)
}
 0x91d   : > { %s1644_s12 = scalar_lea.hbm %s2026_s27, 128  ;;  %s1648_s17 = scalar_lea.hbm %s2138_s1, 256 }
 0x91e   : > { %p1645_p10 = scmp.ne.s32.totalorder %s2026_s27, %s1644_s12  ;;  %p1649_p13 = scmp.lt.u32.totalorder %s2026_s27, %s2138_s1 }
 0x91f   : > { %p1650_p0 = scmp.lt.u32.totalorder %s1648_s17, %s1644_s12  ;;  %p1652_p2 = scmp.lt.u32.totalorder %s1644_s12, %s2026_s27 }
 0x920   : > { %p1646_p11 = pnand %p1645_p10, %p1871_p3 }
 0x921   : > { %p1651_p1 = por %p1650_p0, %p1649_p13 }
 0x922   : > { %p1647_p12 = pneg %p1646_p11 }
 0x923   : > { %p1653_p4 = por %p1652_p2, %p1651_p1 }
 0x925   : > { %p1654_p5 = pnand %p1653_p4, %p1647_p12 }
 0x927   : > { %1657 = shalt.err (!%p1654_p5)
}
 0x928   : > { %1534 = dma.vmem_to_hbm [thread:$0]  (%p1871_p3), %s1262_s30, 128, %s2026_s27, %s1247_s19  }
 0x929 PF: > { %s2140_s25 = sld [smem:[#allocation14_spill]]  ;;  %s2141_s15 = sld [smem:[#allocation8_spill]] }
 0x92f   : > { %p1540_p6 = scmp.ge.s32.totalorder %s2140_s25, 2  ;;  %s1273_s20 = sand.u32 1, %s2141_s15  }
 0x930   : > { %s1274_s21 = scalar_lea.sflag [#allocation6], %s1273_s20 }
 0x931   : > { %p1537_p7 = pnand %p1540_p6, %p1881_p9 }
 0x933   : > { %1691 = dma.done.wait (!%p1537_p7), %s1274_s21, 128  }
 0x934   : > { %1693 = vsyncadd (!%p1537_p7), %s1274_s21, 4294967168  ;;  %s30_s30 = sadd.s32 1, %s2140_s25   ;;  %s2143_s24 = sld [smem:[#allocation9_spill]] }
 0x935   : > { %p27_p8 = scmp.ge.s32.totalorder %s30_s30, 10   ;;  %s2144_s25 = sld [smem:[#allocation10_spill]] }
 0x936   : > { %s2145_s26 = sld [smem:[#allocation19_spill]]  ;;  %s2146_s27 = sld [smem:[#allocation12_spill]] }
 0x937   : > { %s2147_s28 = sld [smem:[#allocation13_spill]]  ;;  %s2148_s29 = sld [smem:[#allocation15_spill]] }
 0x938   : > { %s2149_s0 = sld [smem:[#allocation17_spill]]  ;;  %29 = sbr.rel (!%p27_p8) target bundleno = 12 (0xc), region = 152 }
 0x93f   :  { %1279 = vsyncpa [#allocation6], 1 }
 0x940   :  { %1281 = vsyncpa [#allocation6 + $0x1], 1 }

</bundles_post_ra>
